<compile_context>
chip_gen: v7x
topology: tpu7x:2x2x1
jax: 0.10.0
libtpu: 0.0.40
codegen_flags: <defaults>
</compile_context>

<pallas_src>
import math

import numpy as np
import jax
import jax.numpy as jnp
from jax import lax
from jax.experimental import pallas as pl
from jax.experimental.pallas import tpu as pltpu

LANE = 128          # TPU lane width (fast axis)
ROW_CHUNK = 64      # in-block strip-mine height: 8 vregs per f32 array
TM_TARGET = 1024    # target block height (1024 x 128 f32 = 512 KiB / buffer)


def _round_up(v, m):
    return -(-v // m) * m


def _pick_tm(rows):
    """Block height: big enough to amortize per-step overhead, small enough to
    keep >= ~4 grid steps (megacore sharding on v7x) when the input allows."""
    if rows <= ROW_CHUNK:
        return max(8, _round_up(rows, 8))
    quarter = (rows // 4) // ROW_CHUNK * ROW_CHUNK
    return min(TM_TARGET, max(ROW_CHUNK, quarter))


def _make_kernel(signs, n_hidden, rc, n_chunks):
    """signs: static python tuple of sign(w2[j]) in {-1, 0, +1}."""

    def kernel(a_ref, c_ref, b2_ref, x_ref, o_ref):
        # Hoist all SMEM scalar reads out of the compute loop.
        a = [a_ref[j] for j in range(n_hidden)]
        c = [c_ref[j] for j in range(n_hidden)]
        b2 = b2_ref[0]

        def mlp(x):
            # sum_j w2_j * relu(w1_j*x + b1_j) + b2
            #   = sum_j {max|min}(a_j*x + c_j, 0) + b2   (sign-resolved per j)
            accs = [None, None]      # 2 interleaved accumulators (ILP)
            k = 0
            for j in range(n_hidden):
                s = signs[j]
                if s == 0:
                    continue         # w2_j == 0 contributes nothing
                t = x * a[j] + c[j]
                h = jnp.maximum(t, 0.0) if s > 0 else jnp.minimum(t, 0.0)
                accs[k] = h if accs[k] is None else accs[k] + h
                k = 1 - k
            parts = [p for p in accs if p is not None]
            if not parts:
                return jnp.full_like(x, b2)
            acc = parts[0]
            for p in parts[1:]:
                acc = acc + p
            return acc + b2

        if n_chunks == 1:
            o_ref[...] = mlp(x_ref[...])
        else:
            def chunk(r, carry):
                start = pl.multiple_of(r * rc, rc)
                o_ref[pl.ds(start, rc), :] = mlp(x_ref[pl.ds(start, rc), :])
                return carry
            lax.fori_loop(0, n_chunks, chunk, 0)

    return kernel


def distilled_inv(x, w1, b1, w2, b2, *, tm=None):
    """Elementwise 1->H->1 MLP: squeeze(L2(relu(L1(unsqueeze(x,-1)))), -1).

    w1: (H, 1), b1: (H,), w2: (1, H), b2: (1,)  (PyTorch nn.Linear layout).
    Returns an array with the same shape/dtype as x.
    Weights must be concrete (distilled constants): the w2 signs are baked in
    at trace time for the folded max/min formulation.
    """
    orig_shape = x.shape
    orig_dtype = x.dtype
    n_hidden = w1.shape[0]

    w1f = jnp.asarray(w1, jnp.float32).reshape(n_hidden)
    b1f = jnp.asarray(b1, jnp.float32).reshape(n_hidden)
    w2f = jnp.asarray(w2, jnp.float32).reshape(n_hidden)
    b2f = jnp.asarray(b2, jnp.float32).reshape(1)

    # Fold layer 2 into layer 1 (4 VALU ops / hidden unit instead of 5).
    a = w1f * w2f
    c = b1f * w2f
    # TODO(synk): requires concrete weights; a traced-weight fallback would use
    # the unfused relu(w1*x+b1)*w2 path.
    signs = tuple(int(s) for s in np.sign(np.asarray(jax.device_get(w2f))))

    flat = x.reshape(-1).astype(jnp.float32)
    n = flat.shape[0]
    rows = pl.cdiv(n, LANE)
    if rows * LANE != n:              # pad only when not lane-aligned
        flat = jnp.pad(flat, (0, rows * LANE - n))
    x2 = flat.reshape(rows, LANE)

    if tm is None:
        tm = _pick_tm(rows)
    else:
        tm = max(8, (int(tm) // 8) * 8)
    rc = tm if tm < ROW_CHUNK else ROW_CHUNK
    if tm % rc != 0:
        tm = max(rc, (tm // rc) * rc)
    n_chunks = tm // rc
    num_blocks = pl.cdiv(rows, tm)    # last block may be ragged; Pallas masks it

    smem = pl.BlockSpec(memory_space=pltpu.MemorySpace.SMEM)
    kernel = _make_kernel(signs, n_hidden, rc, n_chunks)
    out = pl.pallas_call(
        kernel,
        out_shape=jax.ShapeDtypeStruct((rows, LANE), jnp.float32),
        grid=(num_blocks,),
        in_specs=[smem, smem, smem,
                  pl.BlockSpec((tm, LANE), lambda i: (i, 0))],
        out_specs=pl.BlockSpec((tm, LANE), lambda i: (i, 0)),
        compiler_params=pltpu.CompilerParams(
            dimension_semantics=("parallel",)),
    )(a, c, b2f, x2)

    out_flat = out.reshape(-1)
    if out_flat.shape[0] != n:
        out_flat = out_flat[:n]
    return out_flat.reshape(orig_shape).astype(orig_dtype)


def _reference(x, w1, b1, w2, b2):
    # Pure-JAX reference of the PyTorch forward pass (unfused formulation).
    xe = x[..., None].astype(jnp.float32)                       # unsqueeze(-1)
    h = jnp.maximum(xe @ w1.T.astype(jnp.float32) + b1, 0.0)    # Linear(1,H)+ReLU
    y = h @ w2.T.astype(jnp.float32) + b2                       # Linear(H,1)
    return jnp.squeeze(y, axis=-1).astype(x.dtype)              # squeeze(-1)


if __name__ == "__main__":
    H = 32
    key = jax.random.PRNGKey(0)
    k_x, k_w1, k_b1, k_w2, k_b2 = jax.random.split(key, 5)

    # Deterministic parameter init (PyTorch nn.Linear-style uniform bounds).
    bound1 = 1.0  # fan_in = 1
    w1 = jax.random.uniform(k_w1, (H, 1), jnp.float32, -bound1, bound1)
    b1 = jax.random.uniform(k_b1, (H,), jnp.float32, -bound1, bound1)
    bound2 = 1.0 / math.sqrt(H)
    w2 = jax.random.uniform(k_w2, (1, H), jnp.float32, -bound2, bound2)
    b2 = jax.random.uniform(k_b2, (1,), jnp.float32, -bound2, bound2)

    # Small NCHW-style input; the module is applied elementwise to any shape.
    x = jax.random.normal(k_x, (2, 4, 16, 16), jnp.float32) + 2.0

    y = distilled_inv(x, w1, b1, w2, b2)
    y = jax.block_until_ready(y)

    y_ref = _reference(x, w1, b1, w2, b2)
    assert y.shape == x.shape and y.dtype == x.dtype
    assert jnp.allclose(y, y_ref, atol=1e-4, rtol=1e-4), float(
        jnp.max(jnp.abs(y - y_ref)))

    print("KERNEL_OK")
</pallas_src>

<mosaic_0001>
module attributes {stable_mosaic.version = 11 : i64} {
  func.func @kernel(%arg0: i32, %arg1: memref<32xf32, #tpu.memory_space<smem>>, %arg2: memref<32xf32, #tpu.memory_space<smem>>, %arg3: memref<1xf32, #tpu.memory_space<smem>>, %arg4: memref<16x128xf32, #tpu.memory_space<vmem>>, %arg5: memref<16x128xf32, #tpu.memory_space<vmem>>) attributes {dimension_semantics = [#tpu.dimension_semantics<parallel>], iteration_bounds = array<i64: 1>, scalar_prefetch = 0 : i64, scratch_operands = 0 : i64, tpu.core_type = #tpu.core_type<tc>, window_params = [{transform_indices = @transform_0, window_bounds = array<i64: 32>}, {transform_indices = @transform_1, window_bounds = array<i64: 32>}, {transform_indices = @transform_2, window_bounds = array<i64: 1>}, {transform_indices = @transform_3, window_bounds = array<i64: 16, 128>}, {transform_indices = @transform_4, window_bounds = array<i64: 16, 128>}]} {
    %c0 = arith.constant 0 : index
    %0 = memref.load %arg1[%c0] : memref<32xf32, #tpu.memory_space<smem>>
    %c1 = arith.constant 1 : index
    %1 = memref.load %arg1[%c1] : memref<32xf32, #tpu.memory_space<smem>>
    %c2 = arith.constant 2 : index
    %2 = memref.load %arg1[%c2] : memref<32xf32, #tpu.memory_space<smem>>
    %c3 = arith.constant 3 : index
    %3 = memref.load %arg1[%c3] : memref<32xf32, #tpu.memory_space<smem>>
    %c4 = arith.constant 4 : index
    %4 = memref.load %arg1[%c4] : memref<32xf32, #tpu.memory_space<smem>>
    %c5 = arith.constant 5 : index
    %5 = memref.load %arg1[%c5] : memref<32xf32, #tpu.memory_space<smem>>
    %c6 = arith.constant 6 : index
    %6 = memref.load %arg1[%c6] : memref<32xf32, #tpu.memory_space<smem>>
    %c7 = arith.constant 7 : index
    %7 = memref.load %arg1[%c7] : memref<32xf32, #tpu.memory_space<smem>>
    %c8 = arith.constant 8 : index
    %8 = memref.load %arg1[%c8] : memref<32xf32, #tpu.memory_space<smem>>
    %c9 = arith.constant 9 : index
    %9 = memref.load %arg1[%c9] : memref<32xf32, #tpu.memory_space<smem>>
    %c10 = arith.constant 10 : index
    %10 = memref.load %arg1[%c10] : memref<32xf32, #tpu.memory_space<smem>>
    %c11 = arith.constant 11 : index
    %11 = memref.load %arg1[%c11] : memref<32xf32, #tpu.memory_space<smem>>
    %c12 = arith.constant 12 : index
    %12 = memref.load %arg1[%c12] : memref<32xf32, #tpu.memory_space<smem>>
    %c13 = arith.constant 13 : index
    %13 = memref.load %arg1[%c13] : memref<32xf32, #tpu.memory_space<smem>>
    %c14 = arith.constant 14 : index
    %14 = memref.load %arg1[%c14] : memref<32xf32, #tpu.memory_space<smem>>
    %c15 = arith.constant 15 : index
    %15 = memref.load %arg1[%c15] : memref<32xf32, #tpu.memory_space<smem>>
    %c16 = arith.constant 16 : index
    %16 = memref.load %arg1[%c16] : memref<32xf32, #tpu.memory_space<smem>>
    %c17 = arith.constant 17 : index
    %17 = memref.load %arg1[%c17] : memref<32xf32, #tpu.memory_space<smem>>
    %c18 = arith.constant 18 : index
    %18 = memref.load %arg1[%c18] : memref<32xf32, #tpu.memory_space<smem>>
    %c19 = arith.constant 19 : index
    %19 = memref.load %arg1[%c19] : memref<32xf32, #tpu.memory_space<smem>>
    %c20 = arith.constant 20 : index
    %20 = memref.load %arg1[%c20] : memref<32xf32, #tpu.memory_space<smem>>
    %c21 = arith.constant 21 : index
    %21 = memref.load %arg1[%c21] : memref<32xf32, #tpu.memory_space<smem>>
    %c22 = arith.constant 22 : index
    %22 = memref.load %arg1[%c22] : memref<32xf32, #tpu.memory_space<smem>>
    %c23 = arith.constant 23 : index
    %23 = memref.load %arg1[%c23] : memref<32xf32, #tpu.memory_space<smem>>
    %c24 = arith.constant 24 : index
    %24 = memref.load %arg1[%c24] : memref<32xf32, #tpu.memory_space<smem>>
    %c25 = arith.constant 25 : index
    %25 = memref.load %arg1[%c25] : memref<32xf32, #tpu.memory_space<smem>>
    %c26 = arith.constant 26 : index
    %26 = memref.load %arg1[%c26] : memref<32xf32, #tpu.memory_space<smem>>
    %c27 = arith.constant 27 : index
    %27 = memref.load %arg1[%c27] : memref<32xf32, #tpu.memory_space<smem>>
    %c28 = arith.constant 28 : index
    %28 = memref.load %arg1[%c28] : memref<32xf32, #tpu.memory_space<smem>>
    %c29 = arith.constant 29 : index
    %29 = memref.load %arg1[%c29] : memref<32xf32, #tpu.memory_space<smem>>
    %c30 = arith.constant 30 : index
    %30 = memref.load %arg1[%c30] : memref<32xf32, #tpu.memory_space<smem>>
    %c31 = arith.constant 31 : index
    %31 = memref.load %arg1[%c31] : memref<32xf32, #tpu.memory_space<smem>>
    %c0_0 = arith.constant 0 : index
    %32 = memref.load %arg2[%c0_0] : memref<32xf32, #tpu.memory_space<smem>>
    %c1_1 = arith.constant 1 : index
    %33 = memref.load %arg2[%c1_1] : memref<32xf32, #tpu.memory_space<smem>>
    %c2_2 = arith.constant 2 : index
    %34 = memref.load %arg2[%c2_2] : memref<32xf32, #tpu.memory_space<smem>>
    %c3_3 = arith.constant 3 : index
    %35 = memref.load %arg2[%c3_3] : memref<32xf32, #tpu.memory_space<smem>>
    %c4_4 = arith.constant 4 : index
    %36 = memref.load %arg2[%c4_4] : memref<32xf32, #tpu.memory_space<smem>>
    %c5_5 = arith.constant 5 : index
    %37 = memref.load %arg2[%c5_5] : memref<32xf32, #tpu.memory_space<smem>>
    %c6_6 = arith.constant 6 : index
    %38 = memref.load %arg2[%c6_6] : memref<32xf32, #tpu.memory_space<smem>>
    %c7_7 = arith.constant 7 : index
    %39 = memref.load %arg2[%c7_7] : memref<32xf32, #tpu.memory_space<smem>>
    %c8_8 = arith.constant 8 : index
    %40 = memref.load %arg2[%c8_8] : memref<32xf32, #tpu.memory_space<smem>>
    %c9_9 = arith.constant 9 : index
    %41 = memref.load %arg2[%c9_9] : memref<32xf32, #tpu.memory_space<smem>>
    %c10_10 = arith.constant 10 : index
    %42 = memref.load %arg2[%c10_10] : memref<32xf32, #tpu.memory_space<smem>>
    %c11_11 = arith.constant 11 : index
    %43 = memref.load %arg2[%c11_11] : memref<32xf32, #tpu.memory_space<smem>>
    %c12_12 = arith.constant 12 : index
    %44 = memref.load %arg2[%c12_12] : memref<32xf32, #tpu.memory_space<smem>>
    %c13_13 = arith.constant 13 : index
    %45 = memref.load %arg2[%c13_13] : memref<32xf32, #tpu.memory_space<smem>>
    %c14_14 = arith.constant 14 : index
    %46 = memref.load %arg2[%c14_14] : memref<32xf32, #tpu.memory_space<smem>>
    %c15_15 = arith.constant 15 : index
    %47 = memref.load %arg2[%c15_15] : memref<32xf32, #tpu.memory_space<smem>>
    %c16_16 = arith.constant 16 : index
    %48 = memref.load %arg2[%c16_16] : memref<32xf32, #tpu.memory_space<smem>>
    %c17_17 = arith.constant 17 : index
    %49 = memref.load %arg2[%c17_17] : memref<32xf32, #tpu.memory_space<smem>>
    %c18_18 = arith.constant 18 : index
    %50 = memref.load %arg2[%c18_18] : memref<32xf32, #tpu.memory_space<smem>>
    %c19_19 = arith.constant 19 : index
    %51 = memref.load %arg2[%c19_19] : memref<32xf32, #tpu.memory_space<smem>>
    %c20_20 = arith.constant 20 : index
    %52 = memref.load %arg2[%c20_20] : memref<32xf32, #tpu.memory_space<smem>>
    %c21_21 = arith.constant 21 : index
    %53 = memref.load %arg2[%c21_21] : memref<32xf32, #tpu.memory_space<smem>>
    %c22_22 = arith.constant 22 : index
    %54 = memref.load %arg2[%c22_22] : memref<32xf32, #tpu.memory_space<smem>>
    %c23_23 = arith.constant 23 : index
    %55 = memref.load %arg2[%c23_23] : memref<32xf32, #tpu.memory_space<smem>>
    %c24_24 = arith.constant 24 : index
    %56 = memref.load %arg2[%c24_24] : memref<32xf32, #tpu.memory_space<smem>>
    %c25_25 = arith.constant 25 : index
    %57 = memref.load %arg2[%c25_25] : memref<32xf32, #tpu.memory_space<smem>>
    %c26_26 = arith.constant 26 : index
    %58 = memref.load %arg2[%c26_26] : memref<32xf32, #tpu.memory_space<smem>>
    %c27_27 = arith.constant 27 : index
    %59 = memref.load %arg2[%c27_27] : memref<32xf32, #tpu.memory_space<smem>>
    %c28_28 = arith.constant 28 : index
    %60 = memref.load %arg2[%c28_28] : memref<32xf32, #tpu.memory_space<smem>>
    %c29_29 = arith.constant 29 : index
    %61 = memref.load %arg2[%c29_29] : memref<32xf32, #tpu.memory_space<smem>>
    %c30_30 = arith.constant 30 : index
    %62 = memref.load %arg2[%c30_30] : memref<32xf32, #tpu.memory_space<smem>>
    %c31_31 = arith.constant 31 : index
    %63 = memref.load %arg2[%c31_31] : memref<32xf32, #tpu.memory_space<smem>>
    %c0_32 = arith.constant 0 : index
    %64 = memref.load %arg3[%c0_32] : memref<1xf32, #tpu.memory_space<smem>>
    %c0_33 = arith.constant 0 : index
    %c0_34 = arith.constant 0 : index
    %65 = vector.load %arg4[%c0_33, %c0_34] : memref<16x128xf32, #tpu.memory_space<vmem>>, vector<16x128xf32>
    %66 = vector.broadcast %0 : f32 to vector<16x128xf32>
    %67 = arith.mulf %65, %66 : vector<16x128xf32>
    %68 = vector.broadcast %32 : f32 to vector<16x128xf32>
    %69 = arith.addf %67, %68 : vector<16x128xf32>
    %cst = arith.constant 0.000000e+00 : f32
    %70 = vector.broadcast %cst : f32 to vector<16x128xf32>
    %71 = arith.minimumf %69, %70 : vector<16x128xf32>
    %72 = vector.broadcast %1 : f32 to vector<16x128xf32>
    %73 = arith.mulf %65, %72 : vector<16x128xf32>
    %74 = vector.broadcast %33 : f32 to vector<16x128xf32>
    %75 = arith.addf %73, %74 : vector<16x128xf32>
    %cst_35 = arith.constant 0.000000e+00 : f32
    %76 = vector.broadcast %cst_35 : f32 to vector<16x128xf32>
    %77 = arith.maximumf %75, %76 : vector<16x128xf32>
    %78 = vector.broadcast %2 : f32 to vector<16x128xf32>
    %79 = arith.mulf %65, %78 : vector<16x128xf32>
    %80 = vector.broadcast %34 : f32 to vector<16x128xf32>
    %81 = arith.addf %79, %80 : vector<16x128xf32>
    %cst_36 = arith.constant 0.000000e+00 : f32
    %82 = vector.broadcast %cst_36 : f32 to vector<16x128xf32>
    %83 = arith.maximumf %81, %82 : vector<16x128xf32>
    %84 = arith.addf %71, %83 : vector<16x128xf32>
    %85 = vector.broadcast %3 : f32 to vector<16x128xf32>
    %86 = arith.mulf %65, %85 : vector<16x128xf32>
    %87 = vector.broadcast %35 : f32 to vector<16x128xf32>
    %88 = arith.addf %86, %87 : vector<16x128xf32>
    %cst_37 = arith.constant 0.000000e+00 : f32
    %89 = vector.broadcast %cst_37 : f32 to vector<16x128xf32>
    %90 = arith.minimumf %88, %89 : vector<16x128xf32>
    %91 = arith.addf %77, %90 : vector<16x128xf32>
    %92 = vector.broadcast %4 : f32 to vector<16x128xf32>
    %93 = arith.mulf %65, %92 : vector<16x128xf32>
    %94 = vector.broadcast %36 : f32 to vector<16x128xf32>
    %95 = arith.addf %93, %94 : vector<16x128xf32>
    %cst_38 = arith.constant 0.000000e+00 : f32
    %96 = vector.broadcast %cst_38 : f32 to vector<16x128xf32>
    %97 = arith.minimumf %95, %96 : vector<16x128xf32>
    %98 = arith.addf %84, %97 : vector<16x128xf32>
    %99 = vector.broadcast %5 : f32 to vector<16x128xf32>
    %100 = arith.mulf %65, %99 : vector<16x128xf32>
    %101 = vector.broadcast %37 : f32 to vector<16x128xf32>
    %102 = arith.addf %100, %101 : vector<16x128xf32>
    %cst_39 = arith.constant 0.000000e+00 : f32
    %103 = vector.broadcast %cst_39 : f32 to vector<16x128xf32>
    %104 = arith.maximumf %102, %103 : vector<16x128xf32>
    %105 = arith.addf %91, %104 : vector<16x128xf32>
    %106 = vector.broadcast %6 : f32 to vector<16x128xf32>
    %107 = arith.mulf %65, %106 : vector<16x128xf32>
    %108 = vector.broadcast %38 : f32 to vector<16x128xf32>
    %109 = arith.addf %107, %108 : vector<16x128xf32>
    %cst_40 = arith.constant 0.000000e+00 : f32
    %110 = vector.broadcast %cst_40 : f32 to vector<16x128xf32>
    %111 = arith.maximumf %109, %110 : vector<16x128xf32>
    %112 = arith.addf %98, %111 : vector<16x128xf32>
    %113 = vector.broadcast %7 : f32 to vector<16x128xf32>
    %114 = arith.mulf %65, %113 : vector<16x128xf32>
    %115 = vector.broadcast %39 : f32 to vector<16x128xf32>
    %116 = arith.addf %114, %115 : vector<16x128xf32>
    %cst_41 = arith.constant 0.000000e+00 : f32
    %117 = vector.broadcast %cst_41 : f32 to vector<16x128xf32>
    %118 = arith.minimumf %116, %117 : vector<16x128xf32>
    %119 = arith.addf %105, %118 : vector<16x128xf32>
    %120 = vector.broadcast %8 : f32 to vector<16x128xf32>
    %121 = arith.mulf %65, %120 : vector<16x128xf32>
    %122 = vector.broadcast %40 : f32 to vector<16x128xf32>
    %123 = arith.addf %121, %122 : vector<16x128xf32>
    %cst_42 = arith.constant 0.000000e+00 : f32
    %124 = vector.broadcast %cst_42 : f32 to vector<16x128xf32>
    %125 = arith.maximumf %123, %124 : vector<16x128xf32>
    %126 = arith.addf %112, %125 : vector<16x128xf32>
    %127 = vector.broadcast %9 : f32 to vector<16x128xf32>
    %128 = arith.mulf %65, %127 : vector<16x128xf32>
    %129 = vector.broadcast %41 : f32 to vector<16x128xf32>
    %130 = arith.addf %128, %129 : vector<16x128xf32>
    %cst_43 = arith.constant 0.000000e+00 : f32
    %131 = vector.broadcast %cst_43 : f32 to vector<16x128xf32>
    %132 = arith.maximumf %130, %131 : vector<16x128xf32>
    %133 = arith.addf %119, %132 : vector<16x128xf32>
    %134 = vector.broadcast %10 : f32 to vector<16x128xf32>
    %135 = arith.mulf %65, %134 : vector<16x128xf32>
    %136 = vector.broadcast %42 : f32 to vector<16x128xf32>
    %137 = arith.addf %135, %136 : vector<16x128xf32>
    %cst_44 = arith.constant 0.000000e+00 : f32
    %138 = vector.broadcast %cst_44 : f32 to vector<16x128xf32>
    %139 = arith.minimumf %137, %138 : vector<16x128xf32>
    %140 = arith.addf %126, %139 : vector<16x128xf32>
    %141 = vector.broadcast %11 : f32 to vector<16x128xf32>
    %142 = arith.mulf %65, %141 : vector<16x128xf32>
    %143 = vector.broadcast %43 : f32 to vector<16x128xf32>
    %144 = arith.addf %142, %143 : vector<16x128xf32>
    %cst_45 = arith.constant 0.000000e+00 : f32
    %145 = vector.broadcast %cst_45 : f32 to vector<16x128xf32>
    %146 = arith.minimumf %144, %145 : vector<16x128xf32>
    %147 = arith.addf %133, %146 : vector<16x128xf32>
    %148 = vector.broadcast %12 : f32 to vector<16x128xf32>
    %149 = arith.mulf %65, %148 : vector<16x128xf32>
    %150 = vector.broadcast %44 : f32 to vector<16x128xf32>
    %151 = arith.addf %149, %150 : vector<16x128xf32>
    %cst_46 = arith.constant 0.000000e+00 : f32
    %152 = vector.broadcast %cst_46 : f32 to vector<16x128xf32>
    %153 = arith.minimumf %151, %152 : vector<16x128xf32>
    %154 = arith.addf %140, %153 : vector<16x128xf32>
    %155 = vector.broadcast %13 : f32 to vector<16x128xf32>
    %156 = arith.mulf %65, %155 : vector<16x128xf32>
    %157 = vector.broadcast %45 : f32 to vector<16x128xf32>
    %158 = arith.addf %156, %157 : vector<16x128xf32>
    %cst_47 = arith.constant 0.000000e+00 : f32
    %159 = vector.broadcast %cst_47 : f32 to vector<16x128xf32>
    %160 = arith.minimumf %158, %159 : vector<16x128xf32>
    %161 = arith.addf %147, %160 : vector<16x128xf32>
    %162 = vector.broadcast %14 : f32 to vector<16x128xf32>
    %163 = arith.mulf %65, %162 : vector<16x128xf32>
    %164 = vector.broadcast %46 : f32 to vector<16x128xf32>
    %165 = arith.addf %163, %164 : vector<16x128xf32>
    %cst_48 = arith.constant 0.000000e+00 : f32
    %166 = vector.broadcast %cst_48 : f32 to vector<16x128xf32>
    %167 = arith.maximumf %165, %166 : vector<16x128xf32>
    %168 = arith.addf %154, %167 : vector<16x128xf32>
    %169 = vector.broadcast %15 : f32 to vector<16x128xf32>
    %170 = arith.mulf %65, %169 : vector<16x128xf32>
    %171 = vector.broadcast %47 : f32 to vector<16x128xf32>
    %172 = arith.addf %170, %171 : vector<16x128xf32>
    %cst_49 = arith.constant 0.000000e+00 : f32
    %173 = vector.broadcast %cst_49 : f32 to vector<16x128xf32>
    %174 = arith.maximumf %172, %173 : vector<16x128xf32>
    %175 = arith.addf %161, %174 : vector<16x128xf32>
    %176 = vector.broadcast %16 : f32 to vector<16x128xf32>
    %177 = arith.mulf %65, %176 : vector<16x128xf32>
    %178 = vector.broadcast %48 : f32 to vector<16x128xf32>
    %179 = arith.addf %177, %178 : vector<16x128xf32>
    %cst_50 = arith.constant 0.000000e+00 : f32
    %180 = vector.broadcast %cst_50 : f32 to vector<16x128xf32>
    %181 = arith.maximumf %179, %180 : vector<16x128xf32>
    %182 = arith.addf %168, %181 : vector<16x128xf32>
    %183 = vector.broadcast %17 : f32 to vector<16x128xf32>
    %184 = arith.mulf %65, %183 : vector<16x128xf32>
    %185 = vector.broadcast %49 : f32 to vector<16x128xf32>
    %186 = arith.addf %184, %185 : vector<16x128xf32>
    %cst_51 = arith.constant 0.000000e+00 : f32
    %187 = vector.broadcast %cst_51 : f32 to vector<16x128xf32>
    %188 = arith.minimumf %186, %187 : vector<16x128xf32>
    %189 = arith.addf %175, %188 : vector<16x128xf32>
    %190 = vector.broadcast %18 : f32 to vector<16x128xf32>
    %191 = arith.mulf %65, %190 : vector<16x128xf32>
    %192 = vector.broadcast %50 : f32 to vector<16x128xf32>
    %193 = arith.addf %191, %192 : vector<16x128xf32>
    %cst_52 = arith.constant 0.000000e+00 : f32
    %194 = vector.broadcast %cst_52 : f32 to vector<16x128xf32>
    %195 = arith.maximumf %193, %194 : vector<16x128xf32>
    %196 = arith.addf %182, %195 : vector<16x128xf32>
    %197 = vector.broadcast %19 : f32 to vector<16x128xf32>
    %198 = arith.mulf %65, %197 : vector<16x128xf32>
    %199 = vector.broadcast %51 : f32 to vector<16x128xf32>
    %200 = arith.addf %198, %199 : vector<16x128xf32>
    %cst_53 = arith.constant 0.000000e+00 : f32
    %201 = vector.broadcast %cst_53 : f32 to vector<16x128xf32>
    %202 = arith.maximumf %200, %201 : vector<16x128xf32>
    %203 = arith.addf %189, %202 : vector<16x128xf32>
    %204 = vector.broadcast %20 : f32 to vector<16x128xf32>
    %205 = arith.mulf %65, %204 : vector<16x128xf32>
    %206 = vector.broadcast %52 : f32 to vector<16x128xf32>
    %207 = arith.addf %205, %206 : vector<16x128xf32>
    %cst_54 = arith.constant 0.000000e+00 : f32
    %208 = vector.broadcast %cst_54 : f32 to vector<16x128xf32>
    %209 = arith.maximumf %207, %208 : vector<16x128xf32>
    %210 = arith.addf %196, %209 : vector<16x128xf32>
    %211 = vector.broadcast %21 : f32 to vector<16x128xf32>
    %212 = arith.mulf %65, %211 : vector<16x128xf32>
    %213 = vector.broadcast %53 : f32 to vector<16x128xf32>
    %214 = arith.addf %212, %213 : vector<16x128xf32>
    %cst_55 = arith.constant 0.000000e+00 : f32
    %215 = vector.broadcast %cst_55 : f32 to vector<16x128xf32>
    %216 = arith.minimumf %214, %215 : vector<16x128xf32>
    %217 = arith.addf %203, %216 : vector<16x128xf32>
    %218 = vector.broadcast %22 : f32 to vector<16x128xf32>
    %219 = arith.mulf %65, %218 : vector<16x128xf32>
    %220 = vector.broadcast %54 : f32 to vector<16x128xf32>
    %221 = arith.addf %219, %220 : vector<16x128xf32>
    %cst_56 = arith.constant 0.000000e+00 : f32
    %222 = vector.broadcast %cst_56 : f32 to vector<16x128xf32>
    %223 = arith.minimumf %221, %222 : vector<16x128xf32>
    %224 = arith.addf %210, %223 : vector<16x128xf32>
    %225 = vector.broadcast %23 : f32 to vector<16x128xf32>
    %226 = arith.mulf %65, %225 : vector<16x128xf32>
    %227 = vector.broadcast %55 : f32 to vector<16x128xf32>
    %228 = arith.addf %226, %227 : vector<16x128xf32>
    %cst_57 = arith.constant 0.000000e+00 : f32
    %229 = vector.broadcast %cst_57 : f32 to vector<16x128xf32>
    %230 = arith.minimumf %228, %229 : vector<16x128xf32>
    %231 = arith.addf %217, %230 : vector<16x128xf32>
    %232 = vector.broadcast %24 : f32 to vector<16x128xf32>
    %233 = arith.mulf %65, %232 : vector<16x128xf32>
    %234 = vector.broadcast %56 : f32 to vector<16x128xf32>
    %235 = arith.addf %233, %234 : vector<16x128xf32>
    %cst_58 = arith.constant 0.000000e+00 : f32
    %236 = vector.broadcast %cst_58 : f32 to vector<16x128xf32>
    %237 = arith.minimumf %235, %236 : vector<16x128xf32>
    %238 = arith.addf %224, %237 : vector<16x128xf32>
    %239 = vector.broadcast %25 : f32 to vector<16x128xf32>
    %240 = arith.mulf %65, %239 : vector<16x128xf32>
    %241 = vector.broadcast %57 : f32 to vector<16x128xf32>
    %242 = arith.addf %240, %241 : vector<16x128xf32>
    %cst_59 = arith.constant 0.000000e+00 : f32
    %243 = vector.broadcast %cst_59 : f32 to vector<16x128xf32>
    %244 = arith.minimumf %242, %243 : vector<16x128xf32>
    %245 = arith.addf %231, %244 : vector<16x128xf32>
    %246 = vector.broadcast %26 : f32 to vector<16x128xf32>
    %247 = arith.mulf %65, %246 : vector<16x128xf32>
    %248 = vector.broadcast %58 : f32 to vector<16x128xf32>
    %249 = arith.addf %247, %248 : vector<16x128xf32>
    %cst_60 = arith.constant 0.000000e+00 : f32
    %250 = vector.broadcast %cst_60 : f32 to vector<16x128xf32>
    %251 = arith.maximumf %249, %250 : vector<16x128xf32>
    %252 = arith.addf %238, %251 : vector<16x128xf32>
    %253 = vector.broadcast %27 : f32 to vector<16x128xf32>
    %254 = arith.mulf %65, %253 : vector<16x128xf32>
    %255 = vector.broadcast %59 : f32 to vector<16x128xf32>
    %256 = arith.addf %254, %255 : vector<16x128xf32>
    %cst_61 = arith.constant 0.000000e+00 : f32
    %257 = vector.broadcast %cst_61 : f32 to vector<16x128xf32>
    %258 = arith.maximumf %256, %257 : vector<16x128xf32>
    %259 = arith.addf %245, %258 : vector<16x128xf32>
    %260 = vector.broadcast %28 : f32 to vector<16x128xf32>
    %261 = arith.mulf %65, %260 : vector<16x128xf32>
    %262 = vector.broadcast %60 : f32 to vector<16x128xf32>
    %263 = arith.addf %261, %262 : vector<16x128xf32>
    %cst_62 = arith.constant 0.000000e+00 : f32
    %264 = vector.broadcast %cst_62 : f32 to vector<16x128xf32>
    %265 = arith.minimumf %263, %264 : vector<16x128xf32>
    %266 = arith.addf %252, %265 : vector<16x128xf32>
    %267 = vector.broadcast %29 : f32 to vector<16x128xf32>
    %268 = arith.mulf %65, %267 : vector<16x128xf32>
    %269 = vector.broadcast %61 : f32 to vector<16x128xf32>
    %270 = arith.addf %268, %269 : vector<16x128xf32>
    %cst_63 = arith.constant 0.000000e+00 : f32
    %271 = vector.broadcast %cst_63 : f32 to vector<16x128xf32>
    %272 = arith.maximumf %270, %271 : vector<16x128xf32>
    %273 = arith.addf %259, %272 : vector<16x128xf32>
    %274 = vector.broadcast %30 : f32 to vector<16x128xf32>
    %275 = arith.mulf %65, %274 : vector<16x128xf32>
    %276 = vector.broadcast %62 : f32 to vector<16x128xf32>
    %277 = arith.addf %275, %276 : vector<16x128xf32>
    %cst_64 = arith.constant 0.000000e+00 : f32
    %278 = vector.broadcast %cst_64 : f32 to vector<16x128xf32>
    %279 = arith.minimumf %277, %278 : vector<16x128xf32>
    %280 = arith.addf %266, %279 : vector<16x128xf32>
    %281 = vector.broadcast %31 : f32 to vector<16x128xf32>
    %282 = arith.mulf %65, %281 : vector<16x128xf32>
    %283 = vector.broadcast %63 : f32 to vector<16x128xf32>
    %284 = arith.addf %282, %283 : vector<16x128xf32>
    %cst_65 = arith.constant 0.000000e+00 : f32
    %285 = vector.broadcast %cst_65 : f32 to vector<16x128xf32>
    %286 = arith.minimumf %284, %285 : vector<16x128xf32>
    %287 = arith.addf %273, %286 : vector<16x128xf32>
    %288 = arith.addf %280, %287 : vector<16x128xf32>
    %289 = vector.broadcast %64 : f32 to vector<16x128xf32>
    %290 = arith.addf %288, %289 : vector<16x128xf32>
    %c0_66 = arith.constant 0 : index
    %c0_67 = arith.constant 0 : index
    %291 = vector.load %arg5[%c0_66, %c0_67] : memref<16x128xf32, #tpu.memory_space<vmem>>, vector<16x128xf32>
    tpu.vector_store %arg5[%c0_66, %c0_67], %290 {strides = array<i32>} : memref<16x128xf32, #tpu.memory_space<vmem>>, vector<16x128xf32>,
    return
  }
  func.func @transform_0(%arg0: i32) -> i32 {
    %c0_i32 = arith.constant 0 : i32
    %c0_i32_0 = arith.constant 0 : i32
    return %c0_i32 : i32
  }
  func.func @transform_1(%arg0: i32) -> i32 {
    %c0_i32 = arith.constant 0 : i32
    %c0_i32_0 = arith.constant 0 : i32
    return %c0_i32 : i32
  }
  func.func @transform_2(%arg0: i32) -> i32 {
    %c0_i32 = arith.constant 0 : i32
    %c0_i32_0 = arith.constant 0 : i32
    return %c0_i32 : i32
  }
  func.func @transform_3(%arg0: i32) -> (i32, i32) {
    %c0_i32 = arith.constant 0 : i32
    %c0_i32_0 = arith.constant 0 : i32
    return %arg0, %c0_i32 : i32, i32
  }
  func.func @transform_4(%arg0: i32) -> (i32, i32) {
    %c0_i32 = arith.constant 0 : i32
    %c0_i32_0 = arith.constant 0 : i32
    return %arg0, %c0_i32 : i32, i32
  }
}

</mosaic_0001>

<bundles_post_ra>
// kernel: tpu_custom_call.1
= control target key start
LH: loop header
LB: loop body
LE: loop exit
PB: predicated region body
PF: predicated region fallthrough
CT: control target
= control target key end

     0   :  { %10 = vsyncpa [#allocation6], 0  ;;  %s1059_s0 = inlined_call_operand.vmem [shape: f32[32], index: 0, kind: input, shape index: {}]   ;;  %s1060_s1 = inlined_call_operand.vmem [shape: f32[32], index: 1, kind: input, shape index: {}]   ;;  %s1061_s2 = inlined_call_operand.<no memory space> [shape: f32[1], index: 2, kind: input, shape index: {}]   ;;  %s1062_s3 = inlined_call_operand.hbm [shape: f32[16,128], index: 3, kind: input, shape index: {}]   ;;  %s1063_s4 = inlined_call_operand.hbm [shape: f32[16,128], index: 4, kind: output, shape index: {}]  }
   0x1   :  { %11 = vsyncpa [#allocation8], 0 }
   0x2   :  { %12 = vsyncpa [#allocation4], 0 }
   0x3   :  { %13 = vsyncpa [#allocation5], 0  ;;  %s20_s17 = sshll.u32 %s1059_s0, 4  ;;  %s30_s20 = sshll.u32 %s1060_s1, 4  ;;  %s21_s17 = int_to_ptr.vmem [resolvable:$true] %s20_s17  ;;  %s31_s20 = int_to_ptr.vmem [resolvable:$true] %s30_s20 }
   0x4   :  { %s535_s21 = scalar_lea.vmem %s21_s17, 16  ;;  %p540_p1 = scmp.lt.s32.totalorder %s21_s17, %s21_s17 }
   0x5   :  { %p536_p0 = scmp.ne.s32.totalorder %s21_s17, %s535_s21  ;;  %p541_p2 = scmp.lt.s32.totalorder %s535_s21, %s535_s21 }
   0x7   :  { %p542_p3 = por %p541_p2, %p540_p1 }
   0x9   :  { %p543_p4 = pnand %p542_p3, %p536_p0 }
   0xb   :  { %546 = shalt.err (!%p543_p4)
}
   0xc   :  { %s611_s22 = smov [#allocation3]   ;;  %s547_s23 = scalar_lea.vmem %s31_s20, 16 }
   0xd   :  { %23 = dma.vmem_to_smem %s21_s17, 16, %s611_s22, [#allocation6]  }
   0xe   :  { %p548_p5 = scmp.ne.s32.totalorder %s31_s20, %s547_s23  ;;  %p552_p6 = scmp.lt.s32.totalorder %s31_s20, %s31_s20 }
   0xf   :  { %p553_p7 = scmp.lt.s32.totalorder %s547_s23, %s547_s23 }
  0x11   :  { %p554_p8 = por %p553_p7, %p552_p6 }
  0x13   :  { %p555_p9 = pnand %p554_p8, %p548_p5 }
  0x15   :  { %558 = shalt.err (!%p555_p9)
}
  0x16   :  { %s612_s0 = smov [#allocation7]   ;;  %s613_s1 = smov [#allocation9]  }
  0x17   :  { %33 = dma.vmem_to_smem %s31_s20, 16, %s612_s0, [#allocation8]  }
  0x18   :  { %s41_s24 = sshll.u32 %s613_s1, 4  ;;  %s559_s27 = scalar_lea.hbm %s1062_s3, 256  ;;  %s42_s24 = int_to_ptr.vmem [resolvable:$true] %s41_s24 }
  0x19   :  { %p560_p10 = scmp.ne.s32.totalorder %s1062_s3, %s559_s27  ;;  %p563_p11 = scmp.lt.u32.totalorder %s559_s27, %s1062_s3 }
  0x1b   :  { %p565_p12 = pnand %p563_p11, %p560_p10 }
  0x1d   :  { %568 = shalt.err (!%p565_p12)
}
  0x1e   :  { %s569_s6 = scalar_lea.vmem %s42_s24, 256  ;;  %p574_p0 = scmp.lt.s32.totalorder %s42_s24, %s42_s24 }
  0x1f   :  { %p570_p13 = scmp.ne.s32.totalorder %s42_s24, %s569_s6  ;;  %p575_p1 = scmp.lt.s32.totalorder %s569_s6, %s569_s6 }
  0x21   :  { %p576_p2 = por %p575_p1, %p574_p0 }
  0x23   :  { %p577_p3 = pnand %p576_p2, %p570_p13 }
  0x25   :  { %580 = shalt.err (!%p577_p3)
}
  0x26   :  { %s614_s7 = smov 128   ;;  %s615_s8 = smov 8  }
  0x27   :  { %47 = dma.hbm_to_vmem [thread:$0]  %s1062_s3, 256, %s42_s24, [#allocation4], %s614_s7, %s614_s7, %s615_s8  }
  0x28   :  { %603 = dma.done.wait [#allocation6], 16  }
  0x29   :  { %604 = vsyncadd [#allocation6], 4294967280 }
  0x2a   :  { %605 = dma.done.wait [#allocation8], 16  }
  0x2b   :  { %606 = vsyncadd [#allocation8], 4294967280 }
  0x2c   :  { %607 = dma.done.wait [#allocation4], 256  }
  0x2d   :  { %608 = vsyncadd [#allocation4], 4294967040 }
  0x2e   :  { %57 = sfence }
  0x2f   :  { %s58_s11 = sld [smem:[#allocation3]]  ;;  %s467_s12 = sld [smem:[#allocation3 + $0x1]]  ;;  %v675_v0 = vld [vmem:[#allocation9] sm:$0xff]  ;;  %v677_v1 = vld [vmem:[#allocation9 + $0x8] sm:$0xff] }
  0x30   :  { %s468_s13 = sld [smem:[#allocation3 + $0x2]]  ;;  %s469_s14 = sld [smem:[#allocation3 + $0x3]] }
  0x31   :  { %s663_s15 = sld [smem:[#allocation3 + $0x4]]  ;;  %s665_s16 = sld [smem:[#allocation3 + $0x5]] }
  0x32   :  { %s667_s17 = sld [smem:[#allocation3 + $0x6]]  ;;  %s669_s18 = sld [smem:[#allocation3 + $0x7]] }
  0x33   :  { %s671_s3 = sld [smem:[#allocation3 + $0x8]]  ;;  %s673_s19 = sld [smem:[#allocation3 + $0x9]] }
  0x34   :  { %s679_s20 = sld [smem:[#allocation3 + $0xa]]  ;;  %s681_s21 = sld [smem:[#allocation3 + $0xb]] }
  0x35   :  { %s683_s22 = sld [smem:[#allocation3 + $0xc]]  ;;  %s685_s23 = sld [smem:[#allocation3 + $0xd]]  ;;  %v125_v2 = vstv %s58_s11  ;;  %v133_v3 = vstv %s467_s12 }
  0x36   :  { %v688_v4 = vmul.f32 %v125_v2, %v675_v0  ;;  %v691_v5 = vmul.f32 %v125_v2, %v677_v1  ;;  %v694_v6 = vmul.f32 %v133_v3, %v675_v0  ;;  %v697_v7 = vmul.f32 %v133_v3, %v677_v1  ;;  %s699_s0 = sld [smem:[#allocation3 + $0xe]]  ;;  %s701_s1 = sld [smem:[#allocation3 + $0xf]] }
  0x37   :  { %v141_v8 = vstv %s468_s13  ;;  %v151_v9 = vstv %s469_s14  ;;  %v161_v10 = vstv %s663_s15  ;;  %v171_v11 = vstv %s665_s16  ;;  %s705_s24 = sld [smem:[#allocation3 + $0x10]]  ;;  %s707_s25 = sld [smem:[#allocation3 + $0x11]] }
  0x38   :  { %v710_v12 = vmul.f32 %v141_v8, %v675_v0  ;;  %v713_v13 = vmul.f32 %v141_v8, %v677_v1  ;;  %v716_v14 = vmul.f32 %v151_v9, %v675_v0  ;;  %v719_v15 = vmul.f32 %v151_v9, %v677_v1  ;;  %s733_s26 = sld [smem:[#allocation3 + $0x12]]  ;;  %s735_s27 = sld [smem:[#allocation3 + $0x13]] }
  0x39   :  { %v722_v16 = vmul.f32 %v161_v10, %v675_v0  ;;  %v725_v17 = vmul.f32 %v161_v10, %v677_v1  ;;  %v728_v18 = vmul.f32 %v171_v11, %v675_v0  ;;  %v731_v19 = vmul.f32 %v171_v11, %v677_v1  ;;  %s741_s28 = sld [smem:[#allocation3 + $0x14]]  ;;  %s743_s29 = sld [smem:[#allocation3 + $0x15]] }
  0x3a   :  { %v181_v20 = vstv %s667_s17  ;;  %v191_v21 = vstv %s669_s18  ;;  %v201_v22 = vstv %s671_s3  ;;  %v211_v23 = vstv %s673_s19  ;;  %s785_s30 = sld [smem:[#allocation7]]  ;;  %s787_s5 = sld [smem:[#allocation7 + $0x1]] }
  0x3b   :  { %v746_v24 = vmul.f32 %v181_v20, %v675_v0  ;;  %v749_v25 = vmul.f32 %v181_v20, %v677_v1  ;;  %v752_v26 = vmul.f32 %v191_v21, %v675_v0  ;;  %v755_v27 = vmul.f32 %v191_v21, %v677_v1  ;;  %s801_s6 = sld [smem:[#allocation7 + $0x2]]  ;;  %s803_s9 = sld [smem:[#allocation7 + $0x3]] }
  0x3c   :  { %v758_v28 = vmul.f32 %v201_v22, %v675_v0  ;;  %v761_v29 = vmul.f32 %v201_v22, %v677_v1  ;;  %v764_v30 = vmul.f32 %v211_v23, %v675_v0  ;;  %v767_v31 = vmul.f32 %v211_v23, %v677_v1  ;;  %s809_s10 = sld [smem:[#allocation7 + $0x4]]  ;;  %s811_s11 = sld [smem:[#allocation7 + $0x5]] }
  0x3d   :  { %v221_v32 = vstv %s679_s20  ;;  %v231_v33 = vstv %s681_s21  ;;  %v241_v34 = vstv %s683_s22  ;;  %v251_v35 = vstv %s685_s23  ;;  %s861_s12 = sld [smem:[#allocation7 + $0x6]]  ;;  %s863_s13 = sld [smem:[#allocation7 + $0x7]] }
  0x3e   :  { %v774_v36 = vmul.f32 %v221_v32, %v675_v0  ;;  %v777_v37 = vmul.f32 %v221_v32, %v677_v1  ;;  %v780_v38 = vmul.f32 %v231_v33, %v675_v0  ;;  %v783_v39 = vmul.f32 %v231_v33, %v677_v1  ;;  %s873_s14 = sld [smem:[#allocation7 + $0x8]]  ;;  %s875_s15 = sld [smem:[#allocation7 + $0x9]] }
  0x3f   :  { %v790_v40 = vmul.f32 %v241_v34, %v675_v0  ;;  %v793_v41 = vmul.f32 %v241_v34, %v677_v1  ;;  %v796_v42 = vmul.f32 %v251_v35, %v675_v0  ;;  %v799_v43 = vmul.f32 %v251_v35, %v677_v1  ;;  %s885_s16 = sld [smem:[#allocation7 + $0xa]]  ;;  %s887_s17 = sld [smem:[#allocation7 + $0xb]] }
  0x40   :  { %v261_v44 = vstv %s699_s0  ;;  %v271_v45 = vstv %s701_s1  ;;  %v281_v46 = vstv %s705_s24  ;;  %v291_v47 = vstv %s707_s25  ;;  %s891_s18 = sld [smem:[#allocation7 + $0xc]]  ;;  %s893_s3 = sld [smem:[#allocation7 + $0xd]] }
  0x41   :  { %v814_v48 = vmul.f32 %v261_v44, %v675_v0  ;;  %v817_v49 = vmul.f32 %v261_v44, %v677_v1  ;;  %v820_v50 = vmul.f32 %v271_v45, %v675_v0  ;;  %v823_v51 = vmul.f32 %v271_v45, %v677_v1  ;;  %s905_s19 = sld [smem:[#allocation7 + $0xe]]  ;;  %s907_s20 = sld [smem:[#allocation7 + $0xf]] }
  0x42   :  { %v826_v52 = vmul.f32 %v281_v46, %v675_v0  ;;  %v829_v53 = vmul.f32 %v281_v46, %v677_v1  ;;  %v832_v54 = vmul.f32 %v291_v47, %v675_v0  ;;  %v835_v55 = vmul.f32 %v291_v47, %v677_v1  ;;  %s911_s21 = sld [smem:[#allocation7 + $0x10]]  ;;  %s913_s22 = sld [smem:[#allocation7 + $0x11]] }
  0x43   :  { %v301_v56 = vstv %s733_s26  ;;  %v311_v57 = vstv %s735_s27  ;;  %v321_v58 = vstv %s741_s28  ;;  %v331_v59 = vstv %s743_s29  ;;  %s925_s23 = sld [smem:[#allocation7 + $0x12]]  ;;  %s927_s0 = sld [smem:[#allocation7 + $0x13]] }
  0x44   :  { %v842_v60 = vmul.f32 %v301_v56, %v675_v0  ;;  %v845_v61 = vmul.f32 %v301_v56, %v677_v1  ;;  %v848_v62 = vmul.f32 %v311_v57, %v675_v0  ;;  %v851_v63 = vmul.f32 %v311_v57, %v677_v1  ;;  %s931_s1 = sld [smem:[#allocation7 + $0x14]]  ;;  %s939_s24 = sld [smem:[#allocation7 + $0x15]] }
  0x45   :  { %v128_v2 = vstv %s785_s30  ;;  %v136_v3 = vstv %s787_s5  ;;  %v856_v8 = vmul.f32 %v321_v58, %v675_v0  ;;  %v859_v9 = vmul.f32 %v321_v58, %v677_v1  ;;  %s945_s25 = sld [smem:[#allocation3 + $0x16]]  ;;  %s949_s27 = sld [smem:[#allocation3 + $0x17]] }
  0x46   :  { %v129_v10 = vadd.f32 %v128_v2, %v688_v4  ;;  %v130_v11 = vadd.f32 %v128_v2, %v691_v5  ;;  %v137_v20 = vadd.f32 %v136_v3, %v694_v6  ;;  %v138_v21 = vadd.f32 %v136_v3, %v697_v7  ;;  %s947_s26 = sld [smem:[#allocation7 + $0x16]]  ;;  %s951_s28 = sld [smem:[#allocation3 + $0x18]] }
  0x47   :  { %v144_v22 = vstv %s801_s6  ;;  %v154_v23 = vstv %s803_s9  ;;  %v164_v32 = vstv %s809_s10  ;;  %v174_v33 = vstv %s811_s11  ;;  %s955_s30 = sld [smem:[#allocation7 + $0x17]]  ;;  %s957_s5 = sld [smem:[#allocation7 + $0x18]] }
  0x48   :  { %v131_v34 = vmin.f32 %v129_v10, 0.0  ;;  %v132_v35 = vmin.f32 %v130_v11, 0.0  ;;  %v145_v44 = vadd.f32 %v144_v22, %v710_v12  ;;  %v146_v4 = vadd.f32 %v144_v22, %v713_v13  ;;  %s969_s6 = sld [smem:[#allocation3 + $0x19]]  ;;  %s979_s10 = sld [smem:[#allocation3 + $0x1a]] }
  0x49   :  { %v139_v45 = vmax.f32 %v137_v20, 0.0  ;;  %v140_v5 = vmax.f32 %v138_v21, 0.0  ;;  %v155_v6 = vadd.f32 %v154_v23, %v716_v14  ;;  %v156_v7 = vadd.f32 %v154_v23, %v719_v15  ;;  %s971_s9 = sld [smem:[#allocation7 + $0x19]]  ;;  %s983_s29 = sld [smem:[#allocation7 + $0x1a]] }
  0x4a   :  { %v147_v46 = vmax.f32 %v145_v44, 0.0  ;;  %v148_v47 = vmax.f32 %v146_v4, 0.0  ;;  %v165_v56 = vadd.f32 %v164_v32, %v722_v16  ;;  %v166_v57 = vadd.f32 %v164_v32, %v725_v17  ;;  %s989_s11 = sld [smem:[#allocation3 + $0x1b]] }
  0x4b   :  { %v157_v58 = vmin.f32 %v155_v6, 0.0  ;;  %v158_v2 = vmin.f32 %v156_v7, 0.0  ;;  %v175_v12 = vadd.f32 %v174_v33, %v728_v18  ;;  %v176_v13 = vadd.f32 %v174_v33, %v731_v19 }
  0x4c   :  { %v149_v3 = vadd.f32 %v147_v46, %v131_v34  ;;  %v150_v10 = vadd.f32 %v148_v47, %v132_v35  ;;  %v167_v11 = vmin.f32 %v165_v56, 0.0  ;;  %v168_v14 = vmin.f32 %v166_v57, 0.0 }
  0x4d   :  { %v159_v15 = vadd.f32 %v157_v58, %v139_v45  ;;  %v160_v16 = vadd.f32 %v158_v2, %v140_v5  ;;  %v177_v17 = vmax.f32 %v175_v12, 0.0  ;;  %v178_v20 = vmax.f32 %v176_v13, 0.0 }
  0x4e   :  { %v169_v21 = vadd.f32 %v167_v11, %v149_v3  ;;  %v170_v22 = vadd.f32 %v168_v14, %v150_v10  ;;  %v184_v23 = vstv %s861_s12  ;;  %v194_v18 = vstv %s863_s13  ;;  %s991_s12 = sld [smem:[#allocation3 + $0x1c]]  ;;  %s997_s13 = sld [smem:[#allocation7 + $0x1b]] }
  0x4f   :  { %v179_v19 = vadd.f32 %v177_v17, %v159_v15  ;;  %v180_v32 = vadd.f32 %v178_v20, %v160_v16  ;;  %v185_v33 = vadd.f32 %v184_v23, %v746_v24  ;;  %v186_v34 = vadd.f32 %v184_v23, %v749_v25 }
  0x50   :  { %v195_v35 = vadd.f32 %v194_v18, %v752_v26  ;;  %v196_v44 = vadd.f32 %v194_v18, %v755_v27  ;;  %v204_v4 = vstv %s873_s14  ;;  %v214_v45 = vstv %s875_s15  ;;  %s999_s14 = sld [smem:[#allocation7 + $0x1c]]  ;;  %s1003_s15 = sld [smem:[#allocation3 + $0x1d]] }
  0x51   :  { %v187_v5 = vmax.f32 %v185_v33, 0.0  ;;  %v188_v6 = vmax.f32 %v186_v34, 0.0  ;;  %v205_v7 = vadd.f32 %v204_v4, %v758_v28  ;;  %v206_v46 = vadd.f32 %v204_v4, %v761_v29 }
  0x52   :  { %v197_v47 = vmin.f32 %v195_v35, 0.0  ;;  %v198_v56 = vmin.f32 %v196_v44, 0.0  ;;  %v215_v24 = vadd.f32 %v214_v45, %v764_v30  ;;  %v216_v25 = vadd.f32 %v214_v45, %v767_v31 }
  0x53   :  { %v189_v57 = vadd.f32 %v187_v5, %v169_v21  ;;  %v190_v26 = vadd.f32 %v188_v6, %v170_v22  ;;  %v207_v58 = vmax.f32 %v205_v7, 0.0  ;;  %v208_v27 = vmax.f32 %v206_v46, 0.0 }
  0x54   :  { %v199_v2 = vadd.f32 %v197_v47, %v179_v19  ;;  %v200_v28 = vadd.f32 %v198_v56, %v180_v32  ;;  %v217_v29 = vmax.f32 %v215_v24, 0.0  ;;  %v218_v12 = vmax.f32 %v216_v25, 0.0 }
  0x55   :  { %v209_v13 = vadd.f32 %v207_v58, %v189_v57  ;;  %v210_v3 = vadd.f32 %v208_v27, %v190_v26  ;;  %v224_v10 = vstv %s885_s16  ;;  %v234_v30 = vstv %s887_s17  ;;  %s1005_s16 = sld [smem:[#allocation7 + $0x1d]]  ;;  %s1011_s17 = sld [smem:[#allocation3 + $0x1e]] }
  0x56   :  { %v219_v31 = vadd.f32 %v217_v29, %v199_v2  ;;  %v220_v11 = vadd.f32 %v218_v12, %v200_v28  ;;  %v225_v14 = vadd.f32 %v224_v10, %v774_v36  ;;  %v226_v15 = vadd.f32 %v224_v10, %v777_v37 }
  0x57   :  { %v235_v16 = vadd.f32 %v234_v30, %v780_v38  ;;  %v236_v17 = vadd.f32 %v234_v30, %v783_v39  ;;  %v244_v20 = vstv %s891_s18  ;;  %v254_v21 = vstv %s893_s3  ;;  %s1015_s18 = sld [smem:[#allocation7 + $0x1e]]  ;;  %s1021_s3 = sld [smem:[#allocation3 + $0x1f]] }
  0x58   :  { %v227_v22 = vmin.f32 %v225_v14, 0.0  ;;  %v228_v23 = vmin.f32 %v226_v15, 0.0  ;;  %v245_v18 = vadd.f32 %v244_v20, %v790_v40  ;;  %v246_v19 = vadd.f32 %v244_v20, %v793_v41 }
  0x59   :  { %v237_v32 = vmin.f32 %v235_v16, 0.0  ;;  %v238_v33 = vmin.f32 %v236_v17, 0.0  ;;  %v255_v36 = vadd.f32 %v254_v21, %v796_v42  ;;  %v256_v37 = vadd.f32 %v254_v21, %v799_v43 }
  0x5a   :  { %v229_v34 = vadd.f32 %v227_v22, %v209_v13  ;;  %v230_v38 = vadd.f32 %v228_v23, %v210_v3  ;;  %v247_v35 = vmin.f32 %v245_v18, 0.0  ;;  %v248_v39 = vmin.f32 %v246_v19, 0.0 }
  0x5b   :  { %v239_v40 = vadd.f32 %v237_v32, %v219_v31  ;;  %v240_v41 = vadd.f32 %v238_v33, %v220_v11  ;;  %v257_v44 = vmin.f32 %v255_v36, 0.0  ;;  %v258_v4 = vmin.f32 %v256_v37, 0.0 }
  0x5c   :  { %v249_v45 = vadd.f32 %v247_v35, %v229_v34  ;;  %v250_v5 = vadd.f32 %v248_v39, %v230_v38  ;;  %v264_v6 = vstv %s905_s19  ;;  %v274_v42 = vstv %s907_s20  ;;  %s1027_s19 = sld [smem:[#allocation7 + $0x1f]] }
  0x5d   :  { %v259_v43 = vadd.f32 %v257_v44, %v239_v40  ;;  %v260_v7 = vadd.f32 %v258_v4, %v240_v41  ;;  %v265_v46 = vadd.f32 %v264_v6, %v814_v48  ;;  %v266_v47 = vadd.f32 %v264_v6, %v817_v49 }
  0x5e   :  { %v275_v56 = vadd.f32 %v274_v42, %v820_v50  ;;  %v276_v24 = vadd.f32 %v274_v42, %v823_v51  ;;  %v284_v25 = vstv %s911_s21  ;;  %v294_v57 = vstv %s913_s22  ;;  %s616_s22 = smov [#allocation10]  }
  0x5f   :  { %v267_v26 = vmax.f32 %v265_v46, 0.0  ;;  %v268_v58 = vmax.f32 %v266_v47, 0.0  ;;  %v285_v27 = vadd.f32 %v284_v25, %v826_v52  ;;  %v286_v2 = vadd.f32 %v284_v25, %v829_v53 }
  0x60   :  { %v277_v28 = vmax.f32 %v275_v56, 0.0  ;;  %v278_v29 = vmax.f32 %v276_v24, 0.0  ;;  %v295_v48 = vadd.f32 %v294_v57, %v832_v54  ;;  %v296_v49 = vadd.f32 %v294_v57, %v835_v55 }
  0x61   :  { %v269_v50 = vadd.f32 %v267_v26, %v249_v45  ;;  %v270_v51 = vadd.f32 %v268_v58, %v250_v5  ;;  %v287_v12 = vmax.f32 %v285_v27, 0.0  ;;  %v288_v13 = vmax.f32 %v286_v2, 0.0 }
  0x62   :  { %v279_v3 = vadd.f32 %v277_v28, %v259_v43  ;;  %v280_v52 = vadd.f32 %v278_v29, %v260_v7  ;;  %v297_v10 = vmin.f32 %v295_v48, 0.0  ;;  %v298_v53 = vmin.f32 %v296_v49, 0.0 }
  0x63   :  { %v289_v54 = vadd.f32 %v287_v12, %v269_v50  ;;  %v290_v55 = vadd.f32 %v288_v13, %v270_v51  ;;  %v304_v30 = vstv %s925_s23  ;;  %v314_v31 = vstv %s927_s0  ;;  %s453_s23 = sshll.u32 %s616_s22, 4  ;;  %s454_s23 = int_to_ptr.vmem [resolvable:$true] %s453_s23 }
  0x64   :  { %v299_v11 = vadd.f32 %v297_v10, %v279_v3  ;;  %v300_v14 = vadd.f32 %v298_v53, %v280_v52  ;;  %v305_v15 = vadd.f32 %v304_v30, %v842_v60  ;;  %v306_v16 = vadd.f32 %v304_v30, %v845_v61  ;;  %s581_s0 = scalar_lea.vmem %s454_s23, 256  ;;  %p586_p5 = scmp.lt.s32.totalorder %s454_s23, %s454_s23 }
  0x65   :  { %v315_v17 = vadd.f32 %v314_v31, %v848_v62  ;;  %v316_v20 = vadd.f32 %v314_v31, %v851_v63  ;;  %v324_v21 = vstv %s931_s1  ;;  %v332_v22 = vmul.f32 %v331_v59, %v675_v0  ;;  %p582_p4 = scmp.ne.s32.totalorder %s454_s23, %s581_s0  ;;  %p587_p6 = scmp.lt.s32.totalorder %s581_s0, %s581_s0 }
  0x66   :  { %v307_v23 = vmax.f32 %v305_v15, 0.0  ;;  %v308_v18 = vmax.f32 %v306_v16, 0.0  ;;  %v325_v19 = vadd.f32 %v324_v21, %v856_v8  ;;  %v326_v32 = vadd.f32 %v324_v21, %v859_v9 }
  0x67   :  { %v317_v60 = vmax.f32 %v315_v17, 0.0  ;;  %v318_v61 = vmax.f32 %v316_v20, 0.0  ;;  %v333_v62 = vmul.f32 %v331_v59, %v677_v1  ;;  %v334_v63 = vstv %s939_s24  ;;  %p588_p7 = por %p587_p6, %p586_p5 }
  0x68   :  { %v309_v33 = vadd.f32 %v307_v23, %v289_v54  ;;  %v310_v36 = vadd.f32 %v308_v18, %v290_v55  ;;  %v327_v37 = vmax.f32 %v325_v19, 0.0  ;;  %v328_v34 = vmax.f32 %v326_v32, 0.0 }
  0x69   :  { %v319_v8 = vadd.f32 %v317_v60, %v299_v11  ;;  %v320_v9 = vadd.f32 %v318_v61, %v300_v14  ;;  %v335_v38 = vadd.f32 %v334_v63, %v332_v22  ;;  %v336_v35 = vadd.f32 %v334_v63, %v333_v62  ;;  %p589_p8 = pnand %p588_p7, %p582_p4 }
  0x6a   :  { %v329_v39 = vadd.f32 %v327_v37, %v309_v33  ;;  %v330_v40 = vadd.f32 %v328_v34, %v310_v36  ;;  %v341_v41 = vstv %s945_s25  ;;  %v344_v44 = vstv %s947_s26 }
  0x6b   :  { %v337_v59 = vmin.f32 %v335_v38, 0.0  ;;  %v338_v4 = vmin.f32 %v336_v35, 0.0  ;;  %v342_v45 = vmul.f32 %v341_v41, %v675_v0  ;;  %v343_v5 = vmul.f32 %v341_v41, %v677_v1 }
  0x6c   :  { %v351_v6 = vstv %s949_s27  ;;  %v354_v42 = vstv %s955_s30  ;;  %v361_v43 = vstv %s951_s28  ;;  %v364_v7 = vstv %s957_s5 }
  0x6d   :  { %v339_v46 = vadd.f32 %v337_v59, %v319_v8  ;;  %v340_v47 = vadd.f32 %v338_v4, %v320_v9  ;;  %v345_v56 = vadd.f32 %v344_v44, %v342_v45  ;;  %v346_v24 = vadd.f32 %v344_v44, %v343_v5 }
  0x6e   :  { %v352_v25 = vmul.f32 %v351_v6, %v675_v0  ;;  %v353_v57 = vmul.f32 %v351_v6, %v677_v1  ;;  %v362_v26 = vmul.f32 %v361_v43, %v675_v0  ;;  %v363_v58 = vmul.f32 %v361_v43, %v677_v1 }
  0x6f   :  { %v347_v27 = vmin.f32 %v345_v56, 0.0  ;;  %v348_v2 = vmin.f32 %v346_v24, 0.0  ;;  %v371_v28 = vstv %s969_s6  ;;  %v374_v29 = vstv %s971_s9 }
  0x70   :  { %v355_v48 = vadd.f32 %v354_v42, %v352_v25  ;;  %v356_v49 = vadd.f32 %v354_v42, %v353_v57  ;;  %v365_v50 = vadd.f32 %v364_v7, %v362_v26  ;;  %v366_v51 = vadd.f32 %v364_v7, %v363_v58 }
  0x71   :  { %v349_v12 = vadd.f32 %v347_v27, %v329_v39  ;;  %v350_v13 = vadd.f32 %v348_v2, %v330_v40  ;;  %v372_v3 = vmul.f32 %v371_v28, %v675_v0  ;;  %v373_v52 = vmul.f32 %v371_v28, %v677_v1 }
  0x72   :  { %v357_v10 = vmin.f32 %v355_v48, 0.0  ;;  %v358_v53 = vmin.f32 %v356_v49, 0.0  ;;  %v367_v54 = vmin.f32 %v365_v50, 0.0  ;;  %v368_v55 = vmin.f32 %v366_v51, 0.0 }
  0x73   :  { %v375_v30 = vadd.f32 %v374_v29, %v372_v3  ;;  %v376_v31 = vadd.f32 %v374_v29, %v373_v52  ;;  %v381_v11 = vstv %s979_s10  ;;  %v384_v16 = vstv %s983_s29 }
  0x74   :  { %v359_v14 = vadd.f32 %v357_v10, %v339_v46  ;;  %v360_v15 = vadd.f32 %v358_v53, %v340_v47  ;;  %v369_v17 = vadd.f32 %v367_v54, %v349_v12  ;;  %v370_v20 = vadd.f32 %v368_v55, %v350_v13 }
  0x75   :  { %v382_v21 = vmul.f32 %v381_v11, %v675_v0  ;;  %v383_v22 = vmul.f32 %v381_v11, %v677_v1  ;;  %v377_v23 = vmin.f32 %v375_v30, 0.0  ;;  %v378_v18 = vmin.f32 %v376_v31, 0.0 }
  0x76   :  { %v391_v19 = vstv %s989_s11  ;;  %v401_v32 = vstv %s991_s12  ;;  %v394_v62 = vstv %s997_s13  ;;  %v404_v63 = vstv %s999_s14 }
  0x77   :  { %v385_v60 = vadd.f32 %v384_v16, %v382_v21  ;;  %v386_v61 = vadd.f32 %v384_v16, %v383_v22  ;;  %v392_v33 = vmul.f32 %v391_v19, %v675_v0  ;;  %v393_v36 = vmul.f32 %v391_v19, %v677_v1 }
  0x78   :  { %v402_v37 = vmul.f32 %v401_v32, %v675_v0  ;;  %v403_v34 = vmul.f32 %v401_v32, %v677_v1  ;;  %v411_v38 = vstv %s1003_s15  ;;  %v414_v35 = vstv %s1005_s16 }
  0x79   :  { %v387_v8 = vmax.f32 %v385_v60, 0.0  ;;  %v388_v9 = vmax.f32 %v386_v61, 0.0  ;;  %v395_v39 = vadd.f32 %v394_v62, %v392_v33  ;;  %v396_v40 = vadd.f32 %v394_v62, %v393_v36 }
  0x7a   :  { %v405_v41 = vadd.f32 %v404_v63, %v402_v37  ;;  %v406_v44 = vadd.f32 %v404_v63, %v403_v34  ;;  %v379_v59 = vadd.f32 %v377_v23, %v359_v14  ;;  %v412_v4 = vmul.f32 %v411_v38, %v675_v0 }
  0x7b   :  { %v413_v45 = vmul.f32 %v411_v38, %v677_v1  ;;  %v380_v5 = vadd.f32 %v378_v18, %v360_v15  ;;  %v397_v6 = vmax.f32 %v395_v39, 0.0  ;;  %v398_v42 = vmax.f32 %v396_v40, 0.0 }
  0x7c   :  { %v389_v43 = vadd.f32 %v387_v8, %v369_v17  ;;  %v415_v7 = vadd.f32 %v414_v35, %v412_v4  ;;  %v421_v47 = vstv %s1011_s17  ;;  %v390_v56 = vadd.f32 %v388_v9, %v370_v20 }
  0x7d   :  { %v416_v46 = vadd.f32 %v414_v35, %v413_v45  ;;  %v407_v24 = vmin.f32 %v405_v41, 0.0  ;;  %v408_v25 = vmin.f32 %v406_v44, 0.0  ;;  %v424_v57 = vstv %s1015_s18 }
  0x7e   :  { %v399_v26 = vadd.f32 %v397_v6, %v379_v59  ;;  %v422_v58 = vmul.f32 %v421_v47, %v675_v0  ;;  %v423_v27 = vmul.f32 %v421_v47, %v677_v1  ;;  %v400_v2 = vadd.f32 %v398_v42, %v380_v5 }
  0x7f   :  { %v417_v28 = vmax.f32 %v415_v7, 0.0  ;;  %v418_v29 = vmax.f32 %v416_v46, 0.0  ;;  %v431_v48 = vstv %s1021_s3  ;;  %v434_v51 = vstv %s1027_s19 }
  0x80   :  { %v425_v49 = vadd.f32 %v424_v57, %v422_v58  ;;  %v426_v50 = vadd.f32 %v424_v57, %v423_v27  ;;  %v409_v12 = vadd.f32 %v407_v24, %v389_v43  ;;  %v410_v13 = vadd.f32 %v408_v25, %v390_v56 }
  0x81   :  { %v432_v3 = vmul.f32 %v431_v48, %v675_v0  ;;  %v433_v52 = vmul.f32 %v431_v48, %v677_v1  ;;  %v419_v54 = vadd.f32 %v417_v28, %v399_v26  ;;  %v420_v55 = vadd.f32 %v418_v29, %v400_v2 }
  0x82   :  { %v427_v10 = vmin.f32 %v425_v49, 0.0  ;;  %v428_v53 = vmin.f32 %v426_v50, 0.0  ;;  %v443_v21 = vstv %s1061_s2 }
  0x83   :  { %v435_v30 = vadd.f32 %v434_v51, %v432_v3  ;;  %v436_v31 = vadd.f32 %v434_v51, %v433_v52 }
  0x84   :  { %v429_v11 = vadd.f32 %v427_v10, %v409_v12  ;;  %v430_v14 = vadd.f32 %v428_v53, %v410_v13 }
  0x85   :  { %v437_v15 = vmin.f32 %v435_v30, 0.0  ;;  %v438_v16 = vmin.f32 %v436_v31, 0.0 }
  0x87   :  { %v439_v17 = vadd.f32 %v437_v15, %v419_v54  ;;  %v440_v20 = vadd.f32 %v438_v16, %v420_v55 }
  0x89   :  { %v441_v0 = vadd.f32 %v439_v17, %v429_v11  ;;  %v442_v1 = vadd.f32 %v440_v20, %v430_v14 }
  0x8b   :  { %v444_v22 = vadd.f32 %v443_v21, %v441_v0  ;;  %v445_v23 = vadd.f32 %v443_v21, %v442_v1 }
  0x8d   :  { %446 = vst [vmem:[#allocation10] sm:$0xff] %v444_v22  ;;  %447 = vst [vmem:[#allocation10 + $0x8] sm:$0xff] %v445_v23 }
  0x8e   :  { %592 = shalt.err (!%p589_p8)
}
  0x8f   :  { %s593_s2 = scalar_lea.hbm %s1063_s4, 256 }
  0x90   :  { %p594_p9 = scmp.ne.s32.totalorder %s1063_s4, %s593_s2  ;;  %p597_p10 = scmp.lt.u32.totalorder %s593_s2, %s1063_s4 }
  0x92   :  { %p599_p11 = pnand %p597_p10, %p594_p9 }
  0x94   :  { %602 = shalt.err (!%p599_p11)
}
  0x95   :  { %459 = dma.vmem_to_hbm [thread:$0]  %s454_s23, 256, %s1063_s4, [#allocation5], %s614_s7, %s614_s7, %s615_s8  }
  0x96   :  { %609 = dma.done.wait [#allocation5], 256  }
  0x97   :  { %610 = vsyncadd [#allocation5], 4294967040 }
  0x98   :  { %463 = vsyncpa [#allocation4], 1 }
  0x99   :  { %464 = vsyncpa [#allocation5], 1 }
  0x9a   :  { %465 = vsyncpa [#allocation6], 1 }
  0x9b   :  { %466 = vsyncpa [#allocation8], 1 }

</bundles_post_ra>
